<compile_context>
chip_gen: v7x
topology: tpu7x:2x2x1
jax: 0.10.0
libtpu: 0.0.40
codegen_flags: <defaults>
</compile_context>

<pallas_src>
import functools

import numpy as np
import jax
import jax.numpy as jnp
from jax.experimental import pallas as pl
from jax.experimental.pallas import tpu as pltpu


LANE = 128  # TPU lane width; K and N*N are padded to multiples of this.


def dim(l: int) -> int:
    return 2 * l + 1


def _round_up(x: int, m: int) -> int:
    return ((x + m - 1) // m) * m


def make_wigner_blocks(basis_ls, seed: int = 0):
    # TODO(synk): e3nn.o3.wigner_3j constants replaced by deterministic PRNG
    # tensors of identical shape (no e3nn dependency in this synthetic kernel).
    blocks = []
    key = jax.random.PRNGKey(seed)
    for i, li in enumerate(basis_ls):
        for j, lj in enumerate(basis_ls):
            if j > i:
                continue
            for lk in range(abs(li - lj), li + lj + 1):
                key, sub = jax.random.split(key)
                blocks.append(
                    jax.random.normal(sub, (dim(li), dim(lj), dim(lk)), dtype=jnp.float32)
                )
    return blocks


def build_linear_map(basis_ls, wigner_blocks):
    """Fold all wigner blocks into one (input_size, basis, basis) linear map."""
    basis_size = sum(dim(l) for l in basis_ls)
    input_size = 0
    for i, li in enumerate(basis_ls):
        for j, lj in enumerate(basis_ls):
            if j > i:
                continue
            for lk in range(abs(li - lj), li + lj + 1):
                input_size += dim(lk)

    W = np.zeros((input_size, basis_size, basis_size), dtype=np.float32)
    c = 0
    z = 0
    for i, li in enumerate(basis_ls):
        a = sum(dim(l) for l in basis_ls[:i])
        for j, lj in enumerate(basis_ls):
            if j > i:
                continue
            b = sum(dim(l) for l in basis_ls[:j])
            for lk in range(abs(li - lj), li + lj + 1):
                wb = np.asarray(wigner_blocks[z])  # (di, dj, dk)
                # matrix[..., a:a+di, b:b+dj] += sum_k coeffs[k] * wb[:, :, k]
                W[c : c + dim(lk), a : a + dim(li), b : b + dim(lj)] += np.transpose(
                    wb, (2, 0, 1)
                )
                c += dim(lk)
                z += 1
    assert c == input_size and z == len(wigner_blocks)
    return W, input_size, basis_size


def build_padded_operator(W, input_size, basis_size, dtype=jnp.bfloat16):
    """Append the identity as one extra K-row, zero-pad to (Kp, N2p), cast ONCE.

    Row `input_size` of the padded operator holds eye(basis).flatten(); the
    matching input column is a constant 1.0, so the identity add rides the MXU
    as one extra contraction step.  The operator is returned already in the
    compute dtype so no per-call cast (a full HBM pass over W) is needed.
    """
    N2 = basis_size * basis_size
    Kp = _round_up(input_size + 1, LANE)
    N2p = _round_up(N2, LANE)  # == N2 when N2 is already a multiple of 128
    W_pad = np.zeros((Kp, N2p), dtype=np.float32)
    W_pad[:input_size, :N2] = W.reshape(input_size, N2)
    W_pad[input_size, :N2] = np.eye(basis_size, dtype=np.float32).reshape(N2)
    return jnp.asarray(W_pad).astype(dtype), Kp, N2p


def symmetric_matrix_kernel(v_ref, w_ref, o_ref):
    # (TB, Kp) @ (Kp, TN) on the MXU with f32 accumulation.  The identity add
    # is already folded into W as the ones-column / eye-row pair.
    o_ref[...] = jnp.dot(
        v_ref[...], w_ref[...], preferred_element_type=jnp.float32
    ).astype(o_ref.dtype)


def _pick_tiles(B, Kp, N2p, in_bytes, out_bytes):
    """Pick (TB, B_pad, TN, num_n) from a tiny bytes-vs-overhead cost model."""
    # N tile: keep the whole N2p slab resident when small; tile it for large
    # bases so the resident W block (Kp*TN) stays well under v7x's 64 MiB VMEM
    # and so tiny-batch calls still expose a second parallel axis.
    TN = N2p
    if N2p > 2048:
        for cand in range(2048, LANE - 1, -LANE):
            if N2p % cand == 0:
                TN = cand
                break
    num_n = N2p // TN

    # Batch tile: HBM bytes per batch row (v is re-read once per N tile) plus
    # ~0.35 us of per-grid-step overhead expressed in byte-equivalents.
    row_bytes = num_n * Kp * in_bytes + N2p * out_bytes
    STEP_BYTES = 350_000
    cands = sorted({16, 32, 64, 128, 256, 512, 1024,
                    min(_round_up(max(B, 1), 16), 1024)})
    best = None
    for tb in cands:
        b_pad = _round_up(max(B, 1), tb)
        steps = (b_pad // tb) * num_n
        cost = b_pad * row_bytes + steps * STEP_BYTES
        if best is None or cost < best[0]:
            best = (cost, tb, b_pad)
    _, TB, B_pad = best
    return TB, B_pad, TN, num_n


def _symmetric_matrix_impl(vector, W_pad, *, input_size, basis_size,
                           compute_dtype, out_dtype):
    """Pallas forward: vector (..., input_size) -> matrix (..., basis, basis)."""
    batch_shape = vector.shape[:-1]
    F = vector.shape[-1]
    assert F == input_size
    assert W_pad.dtype == np.dtype(compute_dtype), (
        "W_pad must be pre-cast to compute_dtype by build_padded_operator")
    B = int(np.prod(batch_shape)) if batch_shape else 1
    Kp, N2p = W_pad.shape
    N2 = basis_size * basis_size

    in_b = np.dtype(compute_dtype).itemsize
    out_b = np.dtype(out_dtype).itemsize
    TB, B_pad, TN, num_n = _pick_tiles(B, Kp, N2p, in_b, out_b)
    num_b = B_pad // TB

    # Activation prep directly in the compute dtype: one cast, one concat (the
    # constant-1 identity column), one pad.  Padded rows lack the 1.0 column so
    # they produce zeros that are sliced off below.
    v2 = vector.reshape(B, F).astype(compute_dtype)
    ones = jnp.ones((B, 1), dtype=compute_dtype)
    v_aug = jnp.concatenate([v2, ones], axis=1)            # (B, F+1)
    v_in = jnp.pad(v_aug, ((0, B_pad - B), (0, Kp - (F + 1))))

    # VMEM budget (double-buffered v/out tiles + W tile); explicit limit with
    # headroom so large bases still compile on v5e (16 MiB default scoped) and
    # the cap keeps us inside v7x's 64 MiB physical VMEM.
    w_b = in_b
    vmem_need = 2 * (TB * Kp * in_b + Kp * TN * w_b + TB * TN * out_b)
    vmem_limit = int(min(max(2 * vmem_need, 32 << 20), 48 << 20))
    # TODO(synk): for bases where even a (Kp, TN<=2048) W tile blows this
    # budget, add a K-reduction grid axis ("arbitrary", last) with an f32 VMEM
    # accumulator + pl.when finalize, and single-buffer the W block.

    cost = pl.CostEstimate(
        flops=2 * B_pad * Kp * N2p,
        transcendentals=0,
        bytes_accessed=num_n * B_pad * Kp * in_b + Kp * N2p * w_b
                       + B_pad * N2p * out_b,
    )

    # Grid: N tiles OUTER (W tile constant across all inner batch steps, so it
    # is DMA'd once per N tile), batch tiles inner; both axes parallel so v7x
    # can shard across its two TensorCores even when one axis is size 1.
    out = pl.pallas_call(
        symmetric_matrix_kernel,
        out_shape=jax.ShapeDtypeStruct((B_pad, N2p), out_dtype),
        grid_spec=pl.GridSpec(
            grid=(num_n, num_b),
            in_specs=[
                pl.BlockSpec((TB, Kp), lambda n, i: (i, 0)),   # batch tile of v
                pl.BlockSpec((Kp, TN), lambda n, i: (0, n)),   # W tile, resident over batch
            ],
            out_specs=pl.BlockSpec((TB, TN), lambda n, i: (i, n)),
        ),
        compiler_params=pltpu.CompilerParams(
            dimension_semantics=("parallel", "parallel"),
            vmem_limit_bytes=vmem_limit,
        ),
        cost_estimate=cost,
    )(v_in, W_pad)

    # Slice off batch / lane padding and reshape.  Because the whole wrapper is
    # jitted, XLA fuses this with the kernel output / downstream consumer
    # instead of making a separate HBM round trip.
    out = out[:B, :N2]
    return out.reshape(batch_shape + (basis_size, basis_size))


# Jitted entry point: pad/cast/slice/reshape fuse with the pallas_call.
symmetric_matrix = jax.jit(
    _symmetric_matrix_impl,
    static_argnames=("input_size", "basis_size", "compute_dtype", "out_dtype"),
)


def reference_forward(vector, basis_ls, wigner_blocks):
    """Pure numpy mirror of the torch forward (block loop), for verification."""
    vector = np.asarray(vector, dtype=np.float32)
    basis_size = sum(dim(l) for l in basis_ls)
    matrix = np.zeros(vector.shape[:-1] + (basis_size, basis_size), dtype=np.float32)
    matrix[..., :, :] = np.eye(basis_size, dtype=np.float32)
    c = 0
    z = 0
    for i, li in enumerate(basis_ls):
        a = sum(dim(l) for l in basis_ls[:i])
        for j, lj in enumerate(basis_ls):
            if j > i:
                continue
            b = sum(dim(l) for l in basis_ls[:j])
            for lk in range(abs(li - lj), li + lj + 1):
                wb = np.asarray(wigner_blocks[z])
                coeffs = vector[..., c : c + dim(lk)]
                block = np.tensordot(coeffs, wb, axes=[[-1], [-1]])
                matrix[..., a : a + dim(li), b : b + dim(lj)] += block
                c += dim(lk)
                z += 1
    return matrix


if __name__ == "__main__":
    # basis_irreps equivalent: "2x0e + 2x1e"  ->  ls = [0, 0, 1, 1]
    basis_ls = [0, 0, 1, 1]

    wigner_blocks = make_wigner_blocks(basis_ls, seed=0)
    W, input_size, basis_size = build_linear_map(basis_ls, wigner_blocks)
    # basis_size = 8, input_size = 42 for this irreps choice.

    # Operators are cast ONCE at build time: bf16 for the fast path, f32 kept
    # only for the exact-precision verification path.
    W_bf16, Kp, N2p = build_padded_operator(W, input_size, basis_size, dtype=jnp.bfloat16)
    W_f32, _, _ = build_padded_operator(W, input_size, basis_size, dtype=jnp.float32)

    key = jax.random.PRNGKey(0)
    vector = jax.random.normal(key, (2, 4, input_size), dtype=jnp.float32)

    ref = reference_forward(np.asarray(vector), basis_ls, wigner_blocks)

    # f32 path: exact-precision check of the padded / identity-folded kernel.
    out_f32 = symmetric_matrix(
        vector, W_f32, input_size=input_size, basis_size=basis_size,
        compute_dtype=jnp.float32, out_dtype=jnp.float32)
    out_f32 = jax.block_until_ready(out_f32)
    assert out_f32.shape == ref.shape, (out_f32.shape, ref.shape)
    np.testing.assert_allclose(np.asarray(out_f32), ref, rtol=1e-4, atol=1e-4)

    # bf16 compute / f32 output (default production path): f32 accumulation.
    out_bf16 = symmetric_matrix(
        vector, W_bf16, input_size=input_size, basis_size=basis_size,
        compute_dtype=jnp.bfloat16, out_dtype=jnp.float32)
    out_bf16 = jax.block_until_ready(out_bf16)
    np.testing.assert_allclose(np.asarray(out_bf16), ref, rtol=5e-2, atol=1e-1)

    # bf16 compute / bf16 output path (halves output HBM bytes when downstream
    # tolerates it); f32 path above remains the correctness gate.
    out_bb = symmetric_matrix(
        vector, W_bf16, input_size=input_size, basis_size=basis_size,
        compute_dtype=jnp.bfloat16, out_dtype=jnp.bfloat16)
    out_bb = jax.block_until_ready(out_bb)
    np.testing.assert_allclose(np.asarray(out_bb, dtype=np.float32), ref,
                               rtol=5e-2, atol=2e-1)

    print("KERNEL_OK")
</pallas_src>

<mosaic_0001>
module attributes {stable_mosaic.version = 11 : i64} {
  func.func @symmetric_matrix_kernel(%arg0: i32, %arg1: i32, %arg2: memref<16x128xf32, #tpu.memory_space<vmem>>, %arg3: memref<128x128xf32, #tpu.memory_space<vmem>>, %arg4: memref<16x128xf32, #tpu.memory_space<vmem>>) attributes {dimension_semantics = [#tpu.dimension_semantics<parallel>, #tpu.dimension_semantics<parallel>], iteration_bounds = array<i64: 1, 1>, scalar_prefetch = 0 : i64, scratch_operands = 0 : i64, tpu.core_type = #tpu.core_type<tc>, window_params = [{transform_indices = @transform_0, window_bounds = array<i64: 16, 128>}, {transform_indices = @transform_1, window_bounds = array<i64: 128, 128>}, {transform_indices = @transform_2, window_bounds = array<i64: 16, 128>}]} {
    %c0 = arith.constant 0 : index
    %c0_0 = arith.constant 0 : index
    %0 = vector.load %arg2[%c0, %c0_0] : memref<16x128xf32, #tpu.memory_space<vmem>>, vector<16x128xf32>
    %c0_1 = arith.constant 0 : index
    %c0_2 = arith.constant 0 : index
    %1 = vector.load %arg3[%c0_1, %c0_2] : memref<128x128xf32, #tpu.memory_space<vmem>>, vector<128x128xf32>
    %cst = arith.constant dense<0.000000e+00> : vector<16x128xf32>
    %2 = tpu.matmul %0, %1, %cst {dimension_numbers = #tpu.dot_dimension_numbers<[1], [0], [0], [1], [0, 0, 1, 1], [], []>} : vector<16x128xf32>, vector<128x128xf32>, vector<16x128xf32> -> vector<16x128xf32>
    %c0_3 = arith.constant 0 : index
    %c0_4 = arith.constant 0 : index
    %3 = vector.load %arg4[%c0_3, %c0_4] : memref<16x128xf32, #tpu.memory_space<vmem>>, vector<16x128xf32>
    tpu.vector_store %arg4[%c0_3, %c0_4], %2 {strides = array<i32>} : memref<16x128xf32, #tpu.memory_space<vmem>>, vector<16x128xf32>,
    return
  }
  func.func @transform_0(%arg0: i32, %arg1: i32) -> (i32, i32) {
    %c0_i32 = arith.constant 0 : i32
    %c0_i32_0 = arith.constant 0 : i32
    return %arg1, %c0_i32 : i32, i32
  }
  func.func @transform_1(%arg0: i32, %arg1: i32) -> (i32, i32) {
    %c0_i32 = arith.constant 0 : i32
    %c0_i32_0 = arith.constant 0 : i32
    return %c0_i32, %arg0 : i32, i32
  }
  func.func @transform_2(%arg0: i32, %arg1: i32) -> (i32, i32) {
    %c0_i32 = arith.constant 0 : i32
    return %arg1, %arg0 : i32, i32
  }
}

</mosaic_0001>

<bundles_post_ra>
// kernel: _symmetric_matrix_impl.1
= control target key start
LH: loop header
LB: loop body
LE: loop exit
PB: predicated region body
PF: predicated region fallthrough
CT: control target
= control target key end

     0   :  { %7 = vsyncpa [#allocation3], 0  ;;  %s237_s9 = smov [#allocation2]   ;;  %s279_s0 = inlined_call_operand.vmem [shape: f32[16,128], index: 0, kind: input, shape index: {}]   ;;  %s280_s1 = inlined_call_operand.hbm [shape: f32[128,128], index: 1, kind: input, shape index: {}]   ;;  %s281_s2 = inlined_call_operand.vmem [shape: f32[16,128], index: 2, kind: output, shape index: {}]  }
   0x1   :  { %s15_s10 = sshll.u32 %s237_s9, 4  ;;  %s213_s13 = scalar_lea.hbm %s280_s1, 2048  ;;  %s16_s10 = int_to_ptr.vmem [resolvable:$true] %s15_s10 }
   0x2   :  { %p214_p0 = scmp.ne.s32.totalorder %s280_s1, %s213_s13  ;;  %p217_p1 = scmp.lt.u32.totalorder %s213_s13, %s280_s1 }
   0x4   :  { %p219_p2 = pnand %p217_p1, %p214_p0 }
   0x6   :  { %222 = shalt.err (!%p219_p2)
}
   0x7   :  { %s223_s18 = scalar_lea.vmem %s16_s10, 2048  ;;  %p228_p4 = scmp.lt.s32.totalorder %s16_s10, %s16_s10 }
   0x8   :  { %p224_p3 = scmp.ne.s32.totalorder %s16_s10, %s223_s18  ;;  %p229_p5 = scmp.lt.s32.totalorder %s223_s18, %s223_s18 }
   0xa   :  { %p230_p6 = por %p229_p5, %p228_p4 }
   0xc   :  { %p231_p7 = pnand %p230_p6, %p224_p3 }
   0xe   :  { %234 = shalt.err (!%p231_p7)
}
   0xf   :  { %s238_s19 = smov 128   ;;  %s239_s20 = smov 8  }
  0x10   :  { %21 = dma.hbm_to_vmem [thread:$0]  %s280_s1, 2048, %s16_s10, [#allocation3], %s238_s19, %s238_s19, %s239_s20  }
  0x11   :  { %235 = dma.done.wait [#allocation3], 2048  }
  0x12   :  { %236 = vsyncadd [#allocation3], 4294965248  ;;  %v27_v0 = vld [vmem:[#allocation2] sm:$0xff]  ;;  %v28_v1 = vld [vmem:[#allocation2 + $0x8] sm:$0xff] }
  0x13   :  { %v29_v2 = vld [vmem:[#allocation2 + $0x10] sm:$0xff]  ;;  %v178_v3 = vpack.c.bf16 %v28_v1, %v27_v0  ;;  %v30_v4 = vld [vmem:[#allocation2 + $0x18] sm:$0xff]  ;;  %v31_v6 = vld [vmem:[#allocation2 + $0x20] sm:$0xff] }
  0x14   :  { %v182_v5 = vpack.c.bf16 %v30_v4, %v29_v2  ;;  %v32_v7 = vld [vmem:[#allocation2 + $0x28] sm:$0xff]  ;;  %v25_v9 = vld [vmem:[%s279_s0] sm:$0xff]  ;;  %v33_v10 = vld [vmem:[#allocation2 + $0x30] sm:$0xff] }
  0x15   :  { %179 = vmatprep.subr.bf16.mxu0 %v178_v3  ;;  %v186_v8 = vpack.c.bf16 %v32_v7, %v31_v6  ;;  %v34_v11 = vld [vmem:[#allocation2 + $0x38] sm:$0xff]  ;;  %175 = vmatprep.mubr.f32.mxu0 %v25_v9  ;;  %v35_v13 = vld [vmem:[#allocation2 + $0x40] sm:$0xff]  ;;  %v36_v14 = vld [vmem:[#allocation2 + $0x48] sm:$0xff] }
  0x16   :  { %181 = vmatpush3.bf16.msra.mxu0 %v178_v3  ;;  %v190_v12 = vpack.c.bf16 %v34_v11, %v33_v10  ;;  %v194_v15 = vpack.c.bf16 %v36_v14, %v35_v13  ;;  %v37_v16 = vld [vmem:[#allocation2 + $0x50] sm:$0xff]  ;;  %v38_v17 = vld [vmem:[#allocation2 + $0x58] sm:$0xff]  ;;  %v39_v19 = vld [vmem:[#allocation2 + $0x60] sm:$0xff] }
  0x17   :  { %183 = vmatprep.subr.bf16.mxu0 %v182_v5  ;;  %v198_v18 = vpack.c.bf16 %v38_v17, %v37_v16  ;;  %v40_v20 = vld [vmem:[#allocation2 + $0x68] sm:$0xff]  ;;  %v41_v22 = vld [vmem:[#allocation2 + $0x70] sm:$0xff]  ;;  %v42_v23 = vld [vmem:[#allocation2 + $0x78] sm:$0xff] }
  0x18   :  { %v202_v21 = vpack.c.bf16 %v40_v20, %v39_v19  ;;  %v206_v24 = vpack.c.bf16 %v42_v23, %v41_v22  ;;  %v26_v25 = vld [vmem:[%s279_s0 + $0x8] sm:$0xff] }
  0x1a   :  { %185 = vmatpush3.bf16.msra.mxu0 %v182_v5 }
  0x1b   :  { %187 = vmatprep.subr.bf16.mxu0 %v186_v8 }
  0x1e   :  { %189 = vmatpush3.bf16.msra.mxu0 %v186_v8 }
  0x1f   :  { %191 = vmatprep.subr.bf16.mxu0 %v190_v12 }
  0x22   :  { %193 = vmatpush3.bf16.msra.mxu0 %v190_v12 }
  0x23   :  { %195 = vmatprep.subr.bf16.mxu0 %v194_v15 }
  0x26   :  { %197 = vmatpush3.bf16.msra.mxu0 %v194_v15 }
  0x27   :  { %199 = vmatprep.subr.bf16.mxu0 %v198_v18 }
  0x2a   :  { %201 = vmatpush3.bf16.msra.mxu0 %v198_v18 }
  0x2b   :  { %203 = vmatprep.subr.bf16.mxu0 %v202_v21 }
  0x2e   :  { %205 = vmatpush3.bf16.msra.mxu0 %v202_v21 }
  0x2f   :  { %207 = vmatprep.subr.bf16.mxu0 %v206_v24 }
  0x32   :  { %209 = vmatpush3.bf16.msra.mxu0 %v206_v24 }
  0x35   :  { %176 = vmatmul.mubr.f32.vlgmr.msra.gmra.mrb[0].mxu0 %v26_v25 }
 0x108   :  { %v177_v26 = vpop.f32.mrb[0].mxu0 }
 0x109   :  { %119 = vst [vmem:[%s281_s2 + $0x8] sm:$0xff] %v177_v26  ;;  %v109_v27 = vpop.f32.mrb[1].mxu0 }
 0x10a   :  { %118 = vst [vmem:[%s281_s2] sm:$0xff] %v109_v27 }
 0x10b   :  { %124 = vsyncpa [#allocation3], 1 }

</bundles_post_ra>
